<compile_context>
chip_gen: v7x
topology: tpu7x:2x2x1
jax: 0.10.0
libtpu: 0.0.40
codegen_flags: <defaults>
</compile_context>

<pallas_src>
import math
import functools

import jax
import jax.numpy as jnp
from jax import lax
from jax.experimental import pallas as pl
from jax.experimental.pallas import tpu as pltpu

# ----------------------------- demo problem sizes ----------------------------
BATCH = 2
SEQ = 128
IN_FEATURES = 128      # K  (lane-dense)
OUT_FEATURES = 128     # N  (lane-dense output -> unmasked vst)
N_EXPERTS = 4


# ----------------------------- Pallas kernel ---------------------------------
def _dmoe_gmm_kernel(step_m_ref, step_e_ref, valid_ref, offsets_ref,
                     x_ref, w_ref, b_ref, o_ref, *, tm):
    """One grid step = one (row-tile, expert) visit of the grouped matmul."""
    c = pl.program_id(0)   # TensorCore slice (parallel axis)
    g = pl.program_id(1)   # visit step within this slice (arbitrary axis)

    # Padding steps reuse the previous (tile, expert) indices -> no DMA, no work.
    @pl.when(valid_ref[c, g] == 1)
    def _():
        e = step_e_ref[c, g]
        lo = offsets_ref[e]          # first sorted row belonging to expert e
        hi = offsets_ref[e + 1]      # one past the last
        row0 = step_m_ref[c, g] * tm
        rows = row0 + lax.broadcasted_iota(jnp.int32, (tm, 1), 0)
        row_mask = (rows >= lo) & (rows < hi)                       # (tm, 1)

        # x (tm, K) bf16 @ W[e] (K, N) bf16 -> f32 on the MXU, native rhs layout.
        y = lax.dot_general(x_ref[...], w_ref[0],
                            dimension_numbers=(((1,), (0,)), ((), ())),
                            preferred_element_type=jnp.float32)     # (tm, N)
        y = y + b_ref[e].astype(jnp.float32)                        # + bias[e]

        # Rows are produced exactly once (disjoint per expert) -> masked write
        # straight into the lane-dense output tile; no accumulator scratch.
        o_ref[...] = jnp.where(row_mask, y.astype(o_ref.dtype), o_ref[...])


# ------------------- visit schedule (scalar-prefetch metadata) ---------------
def _build_visit_schedule(offsets, tile_start, tiles_in_slice, num_steps, tm,
                          n_experts):
    """One step per (row-tile, expert) pair whose row ranges intersect, in
    tile-major order (so the output tile stays resident across its visits and
    the weight index only changes at expert transitions).  Dead visits
    (zero-token experts inside a tile's span) are filtered out.  Padded to the
    static bound `tiles_per_slice + n_experts - 1`; padding steps repeat the
    last real (tile, expert) so no extra DMA is triggered."""
    t = tile_start + jnp.arange(tiles_in_slice, dtype=jnp.int32)
    e = jnp.arange(n_experts, dtype=jnp.int32)
    tile_lo = t[:, None] * tm                                     # (Ts, 1)
    tile_hi = tile_lo + tm
    exp_lo = offsets[:-1][None, :]                                 # (1, E)
    exp_hi = offsets[1:][None, :]
    inter = jnp.maximum(tile_lo, exp_lo) < jnp.minimum(tile_hi, exp_hi)  # (Ts, E)

    m_f = jnp.broadcast_to(t[:, None], inter.shape).reshape(-1)
    e_f = jnp.broadcast_to(e[None, :], inter.shape).reshape(-1)
    v_f = inter.reshape(-1)

    total = tiles_in_slice * n_experts
    if total < num_steps:                                          # static pad
        pad = num_steps - total
        m_f = jnp.concatenate([m_f, jnp.zeros((pad,), jnp.int32)])
        e_f = jnp.concatenate([e_f, jnp.zeros((pad,), jnp.int32)])
        v_f = jnp.concatenate([v_f, jnp.zeros((pad,), dtype=jnp.bool_)])

    # Stable compaction: real visits to the front, tile-major order preserved.
    order = jnp.argsort(jnp.where(v_f, 0, 1).astype(jnp.int32))
    m_s = m_f[order][:num_steps]
    e_s = e_f[order][:num_steps]
    n_valid = jnp.sum(v_f.astype(jnp.int32))

    g = jnp.arange(num_steps, dtype=jnp.int32)
    valid = (g < n_valid).astype(jnp.int32)
    last = jnp.maximum(n_valid - 1, 0)
    m_last = jnp.take(m_s, last)
    e_last = jnp.take(e_s, last)
    step_m = jnp.where(valid == 1, m_s, m_last).astype(jnp.int32)
    step_e = jnp.where(valid == 1, e_s, e_last).astype(jnp.int32)
    return step_m, step_e, valid


def _choose_tm(n_tokens):
    """>=128 row tile (MXU fill + amortized grid-step overhead); grow toward 512
    while keeping enough tiles to pipeline / split across cores."""
    tm = 128
    while tm < 512 and n_tokens >= tm * 8:
        tm *= 2
    return tm


# ------------------------------- wrapper --------------------------------------
def dmoe_linear_forward(x, ids, weight, bias, *, tm=None):
    """Full DMoELinear pipeline: preprocess -> Pallas grouped matmul -> postprocess.

    x:      (..., in_features) float
    ids:    (...,) int expert assignment per token
    weight: (n_experts, out_features, in_features)   (module layout)
    bias:   (n_experts, out_features)
    """
    n_experts, n_out, n_in = weight.shape
    lead_shape = x.shape[:-1]

    # ---- preprocess (torch: sort / gather / bincount).
    # TODO(synk): the token argsort and the inverse-permutation gather are
    # data-dependent permutations with no clean Pallas equivalent; they stay in XLA.
    x_flat = x.reshape(-1, n_in)
    ids_flat = ids.reshape(-1).astype(jnp.int32)
    n_tokens = x_flat.shape[0]
    ids_indices = jnp.argsort(ids_flat)                 # expert-sorted permutation
    x_sorted = jnp.take(x_flat, ids_indices, axis=0)
    batch_sizes = jnp.bincount(ids_flat, length=n_experts)
    offsets = jnp.concatenate(
        [jnp.zeros((1,), jnp.int32), jnp.cumsum(batch_sizes).astype(jnp.int32)])

    # ---- row tiling (padded rows fall outside every expert's [lo, hi) range).
    if tm is None:
        tm = _choose_tm(n_tokens)
    n_pad = -(-n_tokens // tm) * tm
    num_tiles = n_pad // tm
    x_pad = jnp.pad(x_sorted.astype(jnp.bfloat16), ((0, n_pad - n_tokens), (0, 0)))

    # ---- split row tiles across (up to) 2 TensorCore slices (v7x megacore).
    n_slices = 2 if num_tiles >= 2 else 1
    tiles_per_slice = -(-num_tiles // n_slices)
    num_steps = tiles_per_slice + n_experts - 1          # static per-slice bound
    sm_l, se_l, sv_l = [], [], []
    start = 0
    for _ in range(n_slices):
        ts = min(tiles_per_slice, num_tiles - start)
        m_, e_, v_ = _build_visit_schedule(offsets, start, ts, num_steps, tm,
                                           n_experts)
        sm_l.append(m_); se_l.append(e_); sv_l.append(v_)
        start += ts
    step_m = jnp.stack(sm_l)
    step_e = jnp.stack(se_l)
    valid = jnp.stack(sv_l)

    # ---- one-time weight/bias prep: bf16 + MXU-native (E, K, N) rhs layout.
    # TODO(synk): in production store the weights this way in HBM so this
    # transpose/cast pass does not run per call.
    w_kn = jnp.swapaxes(weight, 1, 2)
    if w_kn.dtype != jnp.bfloat16:
        w_kn = w_kn.astype(jnp.bfloat16)
    b_k = bias.reshape(n_experts, 1, n_out)
    if b_k.dtype != jnp.bfloat16:
        b_k = b_k.astype(jnp.bfloat16)

    kernel = functools.partial(_dmoe_gmm_kernel, tm=tm)

    out_pad = pl.pallas_call(
        kernel,
        out_shape=jax.ShapeDtypeStruct((n_pad, n_out), jnp.bfloat16),
        grid_spec=pltpu.PrefetchScalarGridSpec(
            num_scalar_prefetch=4,
            grid=(n_slices, num_steps),
            in_specs=[
                # x_sorted row tile (tm, K)
                pl.BlockSpec((tm, n_in),
                             lambda c, g, sm, se, sv, off: (sm[c, g], 0)),
                # expert weight block (1, K, N), selected data-dependently
                pl.BlockSpec((1, n_in, n_out),
                             lambda c, g, sm, se, sv, off: (se[c, g], 0, 0)),
                # full bias, resident in VMEM (constant index -> single DMA)
                pl.BlockSpec((n_experts, 1, n_out),
                             lambda c, g, sm, se, sv, off: (0, 0, 0)),
            ],
            out_specs=pl.BlockSpec((tm, n_out),
                                   lambda c, g, sm, se, sv, off: (sm[c, g], 0)),
        ),
        # For production shapes also set vmem_limit_bytes past the scoped
        # default (16 MiB v5e / 32 MiB v6e,v7x) when enlarging tiles.
        compiler_params=pltpu.CompilerParams(
            dimension_semantics=("parallel", "arbitrary")),
    )(step_m, step_e, valid, offsets, x_pad, w_kn, b_k)

    # ---- postprocess: un-permute via inverse permutation (gather, no scatter).
    inv_perm = jnp.argsort(ids_indices)
    y = jnp.take(out_pad[:n_tokens], inv_perm, axis=0)
    return y.reshape(*lead_shape, n_out)


# --------------------------- pure-JAX reference --------------------------------
def reference_forward(x, ids, weight, bias):
    """Per-token expert linear: y_t = x_t @ W[id_t].T + b[id_t] (bf16 in, f32 acc)."""
    n_experts, n_out, n_in = weight.shape
    xb = x.astype(jnp.bfloat16).astype(jnp.float32)
    wb = weight.astype(jnp.bfloat16).astype(jnp.float32)
    bb = bias.astype(jnp.bfloat16).astype(jnp.float32)
    ids_flat = ids.reshape(-1)
    x_flat = xb.reshape(-1, n_in)
    y = jnp.einsum("tk,tnk->tn", x_flat, wb[ids_flat]) + bb[ids_flat]
    return y.astype(jnp.bfloat16).reshape(*ids.shape, n_out)


# ---------------------------------- main ---------------------------------------
if __name__ == "__main__":
    key = jax.random.PRNGKey(0)
    kx, ki, kw, kb = jax.random.split(key, 4)

    x = jax.random.normal(kx, (BATCH, SEQ, IN_FEATURES), jnp.float32)
    ids = jax.random.randint(ki, (BATCH, SEQ), 0, N_EXPERTS, dtype=jnp.int32)

    # Per-expert Linear weights (module initializes each expert like nn.Linear).
    bound = 1.0 / math.sqrt(IN_FEATURES)
    weight = jax.random.uniform(kw, (N_EXPERTS, OUT_FEATURES, IN_FEATURES),
                                jnp.float32, minval=-bound, maxval=bound)
    bias = jax.random.uniform(kb, (N_EXPERTS, OUT_FEATURES),
                              jnp.float32, minval=-bound, maxval=bound)

    # Keep MoE weights/bias in bf16 in HBM (cast once, not per call).
    weight_bf16 = weight.astype(jnp.bfloat16)
    bias_bf16 = bias.astype(jnp.bfloat16)

    out = jax.jit(dmoe_linear_forward)(x, ids, weight_bf16, bias_bf16)
    out = jax.block_until_ready(out)

    ref = reference_forward(x, ids, weight, bias)
    assert out.shape == (BATCH, SEQ, OUT_FEATURES)
    assert out.dtype == jnp.bfloat16
    err = jnp.max(jnp.abs(out.astype(jnp.float32) - ref.astype(jnp.float32)))
    assert err < 5e-2, f"mismatch vs JAX reference: max abs err {err}"

    print("KERNEL_OK")
</pallas_src>

<mosaic_0001>
module attributes {stable_mosaic.version = 11 : i64} {
  func.func private @main(%arg0: i32) attributes {dimension_semantics = [#tpu.dimension_semantics<core_parallel>], iteration_bounds = array<i64: 2>, tpu.core_type = #tpu.core_type<sc_scalar_subcore>, window_params = []} {
    return
  }
}

module attributes {stable_mosaic.version = 11 : i64} {
  func.func private @main(%arg0: i32) attributes {dimension_semantics = [#tpu.dimension_semantics<core_parallel>], iteration_bounds = array<i64: 2>, tpu.core_type = #tpu.core_type<sc_scalar_subcore>, window_params = []} {
    return
  }
}

module attributes {stable_mosaic.version = 11 : i64} {
  func.func @_dmoe_gmm_kernel(%arg0: i32, %arg1: i32, %arg2: memref<2x4xi32, #tpu.memory_space<smem>>, %arg3: memref<2x4xi32, #tpu.memory_space<smem>>, %arg4: memref<2x4xi32, #tpu.memory_space<smem>>, %arg5: memref<5xi32, #tpu.memory_space<smem>>, %arg6: memref<128x128xbf16, #tpu.memory_space<vmem>>, %arg7: memref<1x128x128xbf16, #tpu.memory_space<vmem>>, %arg8: memref<4x1x128xbf16, #tpu.memory_space<vmem>>, %arg9: memref<128x128xbf16, #tpu.memory_space<vmem>>) attributes {dimension_semantics = [#tpu.dimension_semantics<parallel>, #tpu.dimension_semantics<arbitrary>], iteration_bounds = array<i64: 2, 4>, scalar_prefetch = 4 : i64, scratch_operands = 0 : i64, tpu.core_type = #tpu.core_type<tc>, window_params = [{transform_indices = @transform_0, window_bounds = array<i64: 128, 128>}, {transform_indices = @transform_1, window_bounds = array<i64: 1, 128, 128>}, {pipeline_mode = #tpu.pipeline_mode<synchronous>, transform_indices = @transform_2, window_bounds = array<i64: 4, 1, 128>}, {transform_indices = @transform_3, window_bounds = array<i64: 128, 128>}]} {
    %0 = arith.index_cast %arg0 : i32 to index
    %1 = arith.index_cast %arg1 : i32 to index
    %2 = memref.load %arg4[%0, %1] : memref<2x4xi32, #tpu.memory_space<smem>>
    %c1_i32 = arith.constant 1 : i32
    %3 = arith.cmpi eq, %2, %c1_i32 : i32
    %4 = arith.extui %3 : i1 to i32
    %c0_i32 = arith.constant 0 : i32
    %5 = arith.cmpi ne, %4, %c0_i32 : i32
    scf.if %5 {
      %6 = arith.index_cast %arg0 : i32 to index
      %7 = arith.index_cast %arg1 : i32 to index
      %8 = memref.load %arg3[%6, %7] : memref<2x4xi32, #tpu.memory_space<smem>>
      %9 = arith.index_cast %8 : i32 to index
      %10 = memref.load %arg5[%9] : memref<5xi32, #tpu.memory_space<smem>>
      %c1_i32_0 = arith.constant 1 : i32
      %11 = arith.addi %8, %c1_i32_0 : i32
      %12 = arith.index_cast %11 : i32 to index
      %13 = memref.load %arg5[%12] : memref<5xi32, #tpu.memory_space<smem>>
      %14 = arith.index_cast %arg0 : i32 to index
      %15 = arith.index_cast %arg1 : i32 to index
      %16 = memref.load %arg2[%14, %15] : memref<2x4xi32, #tpu.memory_space<smem>>
      %c128_i32 = arith.constant 128 : i32
      %17 = arith.muli %16, %c128_i32 : i32
      %18 = tpu.iota {dimensions = array<i32: 0>} : vector<128x1xi32>
      %19 = vector.broadcast %17 : i32 to vector<128x1xi32>
      %20 = arith.addi %19, %18 : vector<128x1xi32>
      %21 = vector.broadcast %10 : i32 to vector<128x1xi32>
      %22 = arith.cmpi sge, %20, %21 : vector<128x1xi32>
      %23 = vector.broadcast %13 : i32 to vector<128x1xi32>
      %24 = arith.cmpi slt, %20, %23 : vector<128x1xi32>
      %25 = arith.andi %22, %24 : vector<128x1xi1>
      %c0 = arith.constant 0 : index
      %c0_1 = arith.constant 0 : index
      %26 = vector.load %arg6[%c0, %c0_1] : memref<128x128xbf16, #tpu.memory_space<vmem>>, vector<128x128xbf16>
      %c0_2 = arith.constant 0 : index
      %c0_3 = arith.constant 0 : index
      %c0_4 = arith.constant 0 : index
      %27 = vector.load %arg7[%c0_2, %c0_3, %c0_4] : memref<1x128x128xbf16, #tpu.memory_space<vmem>>, vector<1x128x128xbf16>
      %28 = vector.shape_cast %27 : vector<1x128x128xbf16> to vector<128x128xbf16>
      %cst = arith.constant dense<0.000000e+00> : vector<128x128xf32>
      %29 = tpu.matmul %26, %28, %cst {dimension_numbers = #tpu.dot_dimension_numbers<[1], [0], [0], [1], [0, 0, 1, 1], [], []>} : vector<128x128xbf16>, vector<128x128xbf16>, vector<128x128xf32> -> vector<128x128xf32>
      %30 = arith.index_cast %8 : i32 to index
      %c0_5 = arith.constant 0 : index
      %c0_6 = arith.constant 0 : index
      %31 = vector.load %arg8[%30, %c0_5, %c0_6] : memref<4x1x128xbf16, #tpu.memory_space<vmem>>, vector<1x1x128xbf16>
      %32 = vector.shape_cast %31 : vector<1x1x128xbf16> to vector<1x128xbf16>
      %33 = arith.extf %32 : vector<1x128xbf16> to vector<1x128xf32>
      %34 = vector.broadcast %33 : vector<1x128xf32> to vector<128x128xf32>
      %35 = arith.addf %29, %34 : vector<128x128xf32>
      %36 = arith.truncf %35 : vector<128x128xf32> to vector<128x128xbf16>
      %c0_7 = arith.constant 0 : index
      %c0_8 = arith.constant 0 : index
      %37 = vector.load %arg9[%c0_7, %c0_8] : memref<128x128xbf16, #tpu.memory_space<vmem>>, vector<128x128xbf16>
      %38 = vector.shape_cast %25 : vector<128x1xi1> to vector<128x1xi1>
      %39 = vector.broadcast %38 : vector<128x1xi1> to vector<128x128xi1>
      %40 = arith.select %39, %36, %37 : vector<128x128xi1>, vector<128x128xbf16>
      %c0_9 = arith.constant 0 : index
      %c0_10 = arith.constant 0 : index
      %41 = vector.load %arg9[%c0_9, %c0_10] : memref<128x128xbf16, #tpu.memory_space<vmem>>, vector<128x128xbf16>
      tpu.vector_store %arg9[%c0_9, %c0_10], %40 {strides = array<i32>} : memref<128x128xbf16, #tpu.memory_space<vmem>>, vector<128x128xbf16>,
    } else {
    }
    return
  }
  func.func @transform_0(%arg0: i32, %arg1: i32, %arg2: memref<2x4xi32, #tpu.memory_space<smem>>, %arg3: memref<2x4xi32, #tpu.memory_space<smem>>, %arg4: memref<2x4xi32, #tpu.memory_space<smem>>, %arg5: memref<5xi32, #tpu.memory_space<smem>>) -> (i32, i32) {
    %0 = arith.index_cast %arg0 : i32 to index
    %1 = arith.index_cast %arg1 : i32 to index
    %2 = memref.load %arg2[%0, %1] : memref<2x4xi32, #tpu.memory_space<smem>>
    %c0_i32 = arith.constant 0 : i32
    %c0_i32_0 = arith.constant 0 : i32
    return %2, %c0_i32 : i32, i32
  }
  func.func @transform_1(%arg0: i32, %arg1: i32, %arg2: memref<2x4xi32, #tpu.memory_space<smem>>, %arg3: memref<2x4xi32, #tpu.memory_space<smem>>, %arg4: memref<2x4xi32, #tpu.memory_space<smem>>, %arg5: memref<5xi32, #tpu.memory_space<smem>>) -> (i32, i32, i32) {
    %0 = arith.index_cast %arg0 : i32 to index
    %1 = arith.index_cast %arg1 : i32 to index
    %2 = memref.load %arg3[%0, %1] : memref<2x4xi32, #tpu.memory_space<smem>>
    %c0_i32 = arith.constant 0 : i32
    %c0_i32_0 = arith.constant 0 : i32
    %c0_i32_1 = arith.constant 0 : i32
    return %2, %c0_i32, %c0_i32_0 : i32, i32, i32
  }
  func.func @transform_2(%arg0: i32, %arg1: i32, %arg2: memref<2x4xi32, #tpu.memory_space<smem>>, %arg3: memref<2x4xi32, #tpu.memory_space<smem>>, %arg4: memref<2x4xi32, #tpu.memory_space<smem>>, %arg5: memref<5xi32, #tpu.memory_space<smem>>) -> (i32, i32, i32) {
    %c0_i32 = arith.constant 0 : i32
    %c0_i32_0 = arith.constant 0 : i32
    %c0_i32_1 = arith.constant 0 : i32
    %c0_i32_2 = arith.constant 0 : i32
    return %c0_i32, %c0_i32_0, %c0_i32_1 : i32, i32, i32
  }
  func.func @transform_3(%arg0: i32, %arg1: i32, %arg2: memref<2x4xi32, #tpu.memory_space<smem>>, %arg3: memref<2x4xi32, #tpu.memory_space<smem>>, %arg4: memref<2x4xi32, #tpu.memory_space<smem>>, %arg5: memref<5xi32, #tpu.memory_space<smem>>) -> (i32, i32) {
    %0 = arith.index_cast %arg0 : i32 to index
    %1 = arith.index_cast %arg1 : i32 to index
    %2 = memref.load %arg2[%0, %1] : memref<2x4xi32, #tpu.memory_space<smem>>
    %c0_i32 = arith.constant 0 : i32
    %c0_i32_0 = arith.constant 0 : i32
    return %2, %c0_i32 : i32, i32
  }
}

</mosaic_0001>

<bundles_post_ra>
// kernel: dmoe_linear_forward.1
= control target key start
LH: loop header
LB: loop body
LE: loop exit
PB: predicated region body
PF: predicated region fallthrough
CT: control target
= control target key end

     0   :  { %s1871_s0 = inlined_call_operand.vmem [shape: s32[2,4], index: 0, kind: input, shape index: {}]   ;;  %s1872_s4 = inlined_call_operand.vmem [shape: bf16[256,128], index: 4, kind: input, shape index: {}]   ;;  %s1873_s5 = inlined_call_operand.vmem [shape: bf16[4,128,128], index: 5, kind: input, shape index: {}]   ;;  %s1874_s6 = inlined_call_operand.vmem [shape: bf16[4,1,128], index: 6, kind: input, shape index: {}]   ;;  %s1875_s7 = inlined_call_operand.vmem [shape: bf16[256,128], index: 7, kind: output, shape index: {}]   ;;  %s1876_s1 = inlined_call_operand.vmem [shape: s32[2,4], index: 1, kind: input, shape index: {}]   ;;  %s1877_s2 = inlined_call_operand.vmem [shape: s32[2,4], index: 2, kind: input, shape index: {}]   ;;  %s1878_s3 = inlined_call_operand.vmem [shape: s32[5], index: 3, kind: input, shape index: {}]  }
   0x1   :  { %s12_s26 = sshll.u32 %s1871_s0, 4  ;;  %s16_s29 = sshll.u32 %s1876_s1, 4  ;;  %s13_s26 = int_to_ptr.vmem [resolvable:$true] %s12_s26  ;;  %s17_s29 = int_to_ptr.vmem [resolvable:$true] %s16_s29 }
   0x2   :  { %s1277_s30 = scalar_lea.vmem %s13_s26, 32  ;;  %p1282_p1 = scmp.lt.s32.totalorder %s13_s26, %s13_s26 }
   0x3   :  { %p1278_p0 = scmp.ne.s32.totalorder %s13_s26, %s1277_s30  ;;  %p1283_p2 = scmp.lt.s32.totalorder %s1277_s30, %s1277_s30 }
   0x5   :  { %p1284_p3 = por %p1283_p2, %p1282_p1 }
   0x7   :  { %p1285_p4 = pnand %p1284_p3, %p1278_p0 }
   0x9   :  { %1288 = shalt.err (!%p1285_p4)  }
   0xa   :  { %s1367_s8 = smov [#allocation3]   ;;  %s1289_s9 = scalar_lea.vmem %s17_s29, 32 }
   0xb   :  { %15 = dma.vmem_to_smem %s13_s26, 32, %s1367_s8, [#allocation2] }
   0xc   :  { %p1290_p5 = scmp.ne.s32.totalorder %s17_s29, %s1289_s9  ;;  %p1294_p6 = scmp.lt.s32.totalorder %s17_s29, %s17_s29 }
   0xd   :  { %p1295_p7 = scmp.lt.s32.totalorder %s1289_s9, %s1289_s9 }
   0xf   :  { %p1296_p8 = por %p1295_p7, %p1294_p6 }
  0x11   :  { %p1297_p9 = pnand %p1296_p8, %p1290_p5 }
  0x13   :  { %1300 = shalt.err (!%p1297_p9)  }
  0x14   :  { %s1368_s0 = smov [#allocation4]   ;;  %s20_s11 = sshll.u32 %s1877_s2, 4  ;;  %s21_s11 = int_to_ptr.vmem [resolvable:$true] %s20_s11 }
  0x15   :  { %19 = dma.vmem_to_smem %s17_s29, 32, %s1368_s0, [#allocation2] }
  0x16   :  { %s24_s14 = sshll.u32 %s1878_s3, 4  ;;  %s1301_s15 = scalar_lea.vmem %s21_s11, 32  ;;  %s25_s14 = int_to_ptr.vmem [resolvable:$true] %s24_s14 }
  0x17   :  { %p1302_p10 = scmp.ne.s32.totalorder %s21_s11, %s1301_s15  ;;  %p1306_p11 = scmp.lt.s32.totalorder %s21_s11, %s21_s11 }
  0x18   :  { %p1307_p12 = scmp.lt.s32.totalorder %s1301_s15, %s1301_s15 }
  0x1a   :  { %p1308_p13 = por %p1307_p12, %p1306_p11 }
  0x1c   :  { %p1309_p0 = pnand %p1308_p13, %p1302_p10 }
  0x1e   :  { %1312 = shalt.err (!%p1309_p0)  }
  0x1f   :  { %s1369_s16 = smov [#allocation5]   ;;  %s1313_s17 = scalar_lea.vmem %s25_s14, 16 }
  0x20   :  { %23 = dma.vmem_to_smem %s21_s11, 32, %s1369_s16, [#allocation2] }
  0x21   :  { %p1314_p1 = scmp.ne.s32.totalorder %s25_s14, %s1313_s17  ;;  %p1318_p2 = scmp.lt.s32.totalorder %s25_s14, %s25_s14 }
  0x22   :  { %p1319_p3 = scmp.lt.s32.totalorder %s1313_s17, %s1313_s17 }
  0x24   :  { %p1320_p4 = por %p1319_p3, %p1318_p2 }
  0x26   :  { %p1321_p5 = pnand %p1320_p4, %p1314_p1 }
  0x28   :  { %1324 = shalt.err (!%p1321_p5)  }
  0x29   :  { %s1370_s2 = smov [#allocation6]  }
  0x2a   :  { %27 = dma.vmem_to_smem %s25_s14, 16, %s1370_s2, [#allocation2] }
  0x2b   :  { %1345 = dma.done.wait [#allocation2], 112 }
  0x2c   :  { %1346 = vsyncadd [#allocation2], 4294967184 }
  0x2d   :  { %29 = sfence }
  0x2e   :  { %s1424_s3 = smov 0   ;;  %s1426_s18 = smov 0  }
  0x2f   :  { %s1428_s19 = smov 0   ;;  %s1430_s20 = smov 0  }
  0x30   :  { %s1432_s21 = smov 0  }
  0x31 LB: > { %s44_s22 = sadd.s32 1, %s1357_s19  ;;  %s47_s23 = sadd.s32 1, %s1361_s20  ;;  %s1365_s21 = sphi %s1432_s21, %s35_s21   ;;  %s1361_s20 = sphi %s1430_s20, %s1942_s20   ;;  %s1357_s19 = sphi %s1428_s19, %s1941_s19   ;;  %s1353_s18 = sphi %s1426_s18, %s1940_s18   ;;  %s1349_s3 = sphi %s1424_s3, %s1939_s3  }
  0x32   : > { %p45_p6 = scmp.ge.s32.totalorder %s44_s22, 4  ;;  %p1080_p7 = scmp.ge.s32.totalorder %s1365_s21, 1 }
  0x33   : > { %p262_p8 = scmp.lt.s32.totalorder %s1365_s21, 9 }
  0x34   : > { %s1944_s22 = smov (%p45_p6, %s44_s22), 0  ;;  %s1946_s23 = smov (!%p45_p6, %s47_s23), %s1361_s20 }
  0x35   : > { %p263_p9 = pnand %p1080_p7, %p262_p8  ;;  %p49_p10 = scmp.ge.s32.totalorder %s1946_s23, 2 }
  0x36   : > { %s315_s24 = sshra.s32 (!%p263_p9), %s1349_s3, 7  ;;  %s320_s25 = sand.u32 (!%p263_p9), 127, %s1349_s3 }
  0x37   : > { %s1948_s23 = smov (%p49_p10, %s1946_s23), 0  ;;  %266 = sbr.rel (%p263_p9) target bundleno = 339 (0x153), region = 32 }
  0x38   : > { %s317_s26 = sadd.s32 (!%p263_p9), %s1353_s18, %s315_s24 }
  0x39   : > { %s1081_s27 = sshll.u32 (!%p263_p9), %s317_s26, 7 }
  0x3a   : > { %s1454_s28 = sadd.s32 (!%p263_p9), %s1081_s27, %s320_s25 }
  0x3b   : > { %s322_s29 = sld [smem:[#allocation3 + %s1454_s28]] (!%p263_p9) }
  0x3c   : > { %s344_s30 = sld [smem:[#allocation4 + %s1454_s28]] (!%p263_p9) }
  0x3d   : > { %s365_s8 = sld [smem:[#allocation3 + %s1454_s28]] (!%p263_p9) }
  0x3e   : > { %s390_s9 = sld [smem:[#allocation5 + %s1454_s28]] }
  0x41   : > { %s1082_s0 = sshll.u32 %s322_s29, 4 }
  0x42   : > { %p345_p11 = scmp.lt.s32.totalorder %s344_s30, 3  ;;  %p324_p12 = scmp.lt.s32.totalorder %s1082_s0, 31 }
  0x43   : > { %s1088_s1 = sshll.u32 %s365_s8, 4 }
  0x44   : > { %s1950_s30 = smov (!%p345_p11, %s344_s30), 3  ;;  %s1952_s0 = smov (!%p324_p12, %s1082_s0), 31 }
  0x45   : > { %s1143_s10 = sshll.u32 %s1950_s30, 6  ;;  %p367_p13 = scmp.lt.s32.totalorder %s1088_s1, 31 }
  0x46   : > { %s1083_s11 = sshll.u32 %s1952_s0, 2  ;;  %s1463_s14 = scalar_lea.vmem %s1873_s5, %s1143_s10 }
  0x47   : > { %s1468_s17 = scalar_lea.vmem %s1872_s4, %s1083_s11  ;;  %s1954_s1 = smov (!%p367_p13, %s1088_s1), 31 }
  0x48   : > { %s1089_s2 = sshll.u32 %s1954_s1, 2  ;;  %p1091_p0 = scmp.ne.s32.totalorder %s390_s9, 1 }
  0x49   : > { %s1473_s24 = scalar_lea.vmem %s1875_s7, %s1089_s2  ;;  %v1253_v0 = vld [vmem:[%s1463_s14] sm:$0xff] (!%p1091_p0)   ;;  %v1254_v1 = vld [vmem:[%s1463_s14 + $0x8] sm:$0xff] (!%p1091_p0)   ;;  %v1255_v2 = vld [vmem:[%s1463_s14 + $0x10] sm:$0xff] (!%p1091_p0)   ;;  %s1492_s25 = sld [smem:[#allocation4 + %s1454_s28]] (!%p1091_p0)  ;;  %v401_v16 = vlaneseq (!%p1091_p0)  ;;  %v1895_v48 = vmov (!%p1091_p0), 0  ;;  %v1897_v51 = vmov (!%p1091_p0), 0 }
  0x4a   : > { %394 = sbr.rel (%p1091_p0) target bundleno = 339 (0x153), region = 36  ;;  %1160 = vmatprep.subr.bf16.mxu0 (!%p1091_p0), %v1253_v0  ;;  %1192 = vmatprep.subr.bf16.mxu1 (!%p1091_p0), %v1253_v0  ;;  %v1256_v3 = vld [vmem:[%s1463_s14 + $0x18] sm:$0xff] (!%p1091_p0)   ;;  %v1261_v4 = vld [vmem:[%s1468_s17] sm:$0xff] (!%p1091_p0)   ;;  %v1258_v7 = vld [vmem:[%s1463_s14 + $0x28] sm:$0xff] (!%p1091_p0)   ;;  %s399_s26 = sld [smem:[#allocation3 + %s1454_s28]] (!%p1091_p0) }
  0x4b   : > { %1161 = vmatpush3.bf16.msra.mxu0 (!%p1091_p0), %v1253_v0  ;;  %1200 = vmatpush3.bf16.msra.mxu1 (!%p1091_p0), %v1253_v0  ;;  %v1262_v5 = vld [vmem:[%s1468_s17 + $0x20] sm:$0xff] (!%p1091_p0)   ;;  %v1259_v8 = vld [vmem:[%s1463_s14 + $0x30] sm:$0xff] (!%p1091_p0)   ;;  %v1260_v9 = vld [vmem:[%s1463_s14 + $0x38] sm:$0xff] (!%p1091_p0)   ;;  %v1496_v17 = vshrl.u32 (!%p1091_p0), %v401_v16, 7 }
  0x4c   : > { %1162 = vmatprep.subr.bf16.mxu0 (!%p1091_p0), %v1254_v1  ;;  %1193 = vmatprep.subr.bf16.mxu1 (!%p1091_p0), %v1254_v1  ;;  %v1257_v6 = vld [vmem:[%s1463_s14 + $0x20] sm:$0xff] (!%p1091_p0)   ;;  %v1263_v10 = vld [vmem:[%s1468_s17 + $0x8] sm:$0xff] (!%p1091_p0)   ;;  %v1265_v12 = vld [vmem:[%s1468_s17 + $0x10] sm:$0xff] (!%p1091_p0)  }
  0x4d   : > { %1176 = vmatprep.mubr.bf16.mxu0 (!%p1091_p0), %v1261_v4  ;;  %1184 = vmatprep.mubr.bf16.mxu1 (!%p1091_p0), %v1262_v5  ;;  %v1264_v11 = vld [vmem:[%s1468_s17 + $0x28] sm:$0xff] (!%p1091_p0)   ;;  %v1266_v13 = vld [vmem:[%s1468_s17 + $0x30] sm:$0xff] (!%p1091_p0)   ;;  %v1267_v14 = vld [vmem:[%s1468_s17 + $0x18] sm:$0xff] (!%p1091_p0)   ;;  %v404_v18 = vadd.s32 (!%p1091_p0), 16, %v1496_v17  ;;  %v405_v19 = vadd.s32 (!%p1091_p0), 24, %v1496_v17  ;;  %v412_v21 = vadd.s32 (!%p1091_p0), 80, %v1496_v17 }
  0x4e   : > { %v1268_v15 = vld [vmem:[%s1468_s17 + $0x38] sm:$0xff] (!%p1091_p0)   ;;  %v413_v22 = vadd.s32 (!%p1091_p0), 88, %v1496_v17  ;;  %v403_v27 = vadd.s32 (!%p1091_p0), 8, %v1496_v17  ;;  %v410_v30 = vadd.s32 (!%p1091_p0), 64, %v1496_v17  ;;  %v411_v33 = vadd.s32 (!%p1091_p0), 72, %v1496_v17  ;;  %v1270_v42 = vld [vmem:[%s1473_s24 + $0x28] sm:$0xff] (!%p1091_p0)  }
  0x4f   : > { %1163 = vmatpush3.bf16.msra.mxu0 (!%p1091_p0), %v1254_v1  ;;  %1201 = vmatpush3.bf16.msra.mxu1 (!%p1091_p0), %v1254_v1  ;;  %s397_s27 = sadd.s32 (!%p1091_p0), 1, %s1492_s25  ;;  %s396_s29 = sld [smem:[#allocation6 + %s1492_s25]] (!%p1091_p0)  ;;  %v408_v36 = vadd.s32 (!%p1091_p0), 48, %v1496_v17  ;;  %v409_v40 = vadd.s32 (!%p1091_p0), 56, %v1496_v17  ;;  %v416_v44 = vadd.s32 (!%p1091_p0), 112, %v1496_v17  ;;  %v417_v47 = vadd.s32 (!%p1091_p0), 120, %v1496_v17 }
  0x50   : > { %1164 = vmatprep.subr.bf16.mxu0 (!%p1091_p0), %v1255_v2  ;;  %1194 = vmatprep.subr.bf16.mxu1 (!%p1091_p0), %v1255_v2  ;;  %s398_s30 = sld [smem:[#allocation6 + %s397_s27]] (!%p1091_p0)  ;;  %s1092_s8 = sshll.u32 (!%p1091_p0), %s399_s26, 7  ;;  %v406_v50 = vadd.s32 (!%p1091_p0), 32, %v1496_v17  ;;  %v407_v53 = vadd.s32 (!%p1091_p0), 40, %v1496_v17  ;;  %v414_v56 = vadd.s32 (!%p1091_p0), 96, %v1496_v17  ;;  %v415_v58 = vadd.s32 (!%p1091_p0), 104, %v1496_v17 }
  0x51   : > { %v1501_v20 = vstv %s1092_s8  ;;  %s517_s0 = scalar_lea.vmem %s1874_s6, %s1492_s25  ;;  %v522_v62 = vsub.s32 0, %v1496_v17  ;;  %v1371_v1 = vmov 0  }
  0x52   : > { %v421_v23 = vadd.s32 %v1501_v20, %v404_v18  ;;  %v422_v24 = vadd.s32 %v1501_v20, %v405_v19  ;;  %v429_v28 = vadd.s32 %v1501_v20, %v412_v21  ;;  %v430_v29 = vadd.s32 %v1501_v20, %v413_v22  ;;  %v518_v59 = vld [vmem:[%s517_s0] sm:$0x1] }
  0x53   : > { %1165 = vmatpush3.bf16.msra.mxu0 %v1255_v2  ;;  %1202 = vmatpush3.bf16.msra.mxu1 %v1255_v2  ;;  %v419_v31 = vadd.s32 %v1501_v20, %v1496_v17  ;;  %v420_v32 = vadd.s32 %v1501_v20, %v403_v27  ;;  %v427_v35 = vadd.s32 %v1501_v20, %v410_v30  ;;  %v519_v0 = vunpack.c.l.bf16 %v518_v59 }
  0x54   : > { %1166 = vmatprep.subr.bf16.mxu0 %v1256_v3  ;;  %1195 = vmatprep.subr.bf16.mxu1 %v1256_v3  ;;  %v428_v39 = vadd.s32 %v1501_v20, %v411_v33  ;;  %v425_v43 = vadd.s32 %v1501_v20, %v408_v36  ;;  %v426_v46 = vadd.s32 %v1501_v20, %v409_v40  ;;  %v1269_v40 = vld [vmem:[%s1473_s24 + $0x8] sm:$0xff]   ;;  %v1276_v33 = vld [vmem:[%s1473_s24 + $0x30] sm:$0xff]  }
  0x55   : > { %v1507_v25 = vstv %s396_s29  ;;  %v433_v49 = vadd.s32 %v1501_v20, %v416_v44  ;;  %v434_v52 = vadd.s32 %v1501_v20, %v417_v47  ;;  %v423_v55 = vadd.s32 %v1501_v20, %v406_v50 }
  0x56   : > { %v1509_v26 = vstv %s398_s30  ;;  %vm438_vm0 = vcmp.ge.s32.totalorder %v421_v23, %v1507_v25  ;;  %vm439_vm2 = vcmp.ge.s32.totalorder %v422_v24, %v1507_v25  ;;  %vm446_vm4 = vcmp.ge.s32.totalorder %v429_v28, %v1507_v25 }
  0x57   : > { %1167 = vmatpush3.bf16.msra.mxu0 %v1256_v3  ;;  %1203 = vmatpush3.bf16.msra.mxu1 %v1256_v3  ;;  %vm455_vm1 = vcmp.lt.s32.totalorder %v421_v23, %v1509_v26  ;;  %vm456_vm3 = vcmp.lt.s32.totalorder %v422_v24, %v1509_v26  ;;  %vm463_vm5 = vcmp.lt.s32.totalorder %v429_v28, %v1509_v26  ;;  %v1274_v23 = vld [vmem:[%s1473_s24 + $0x38] sm:$0xff]  }
  0x58   : > { %1168 = vmatprep.subr.bf16.mxu0 %v1257_v6  ;;  %1196 = vmatprep.subr.bf16.mxu1 %v1257_v6  ;;  %vm1525_vm6 = vmand %vm438_vm0, %vm455_vm1  ;;  %vm447_vm7 = vcmp.ge.s32.totalorder %v430_v29, %v1507_v25  ;;  %vm464_vm8 = vcmp.lt.s32.totalorder %v430_v29, %v1509_v26  ;;  %vm436_vm10 = vcmp.ge.s32.totalorder %v419_v31, %v1507_v25 }
  0x59   : > { %vm1533_vm9 = vmand %vm439_vm2, %vm456_vm3  ;;  %vm453_vm11 = vcmp.lt.s32.totalorder %v419_v31, %v1509_v26  ;;  %vm437_vm13 = vcmp.ge.s32.totalorder %v420_v32, %v1507_v25  ;;  %vm454_vm14 = vcmp.lt.s32.totalorder %v420_v32, %v1509_v26  ;;  %vm444_vm1 = vcmp.ge.s32.totalorder %v427_v35, %v1507_v25 }
  0x5a   : > { %vm1539_vm12 = vmand %vm446_vm4, %vm463_vm5  ;;  %vm461_vm2 = vcmp.lt.s32.totalorder %v427_v35, %v1509_v26  ;;  %vm442_vm4 = vcmp.ge.s32.totalorder %v425_v43, %v1507_v25  ;;  %vm460_vm5 = vcmp.lt.s32.totalorder %v426_v46, %v1509_v26  ;;  %v424_v60 = vadd.s32 %v1501_v20, %v407_v53 }
  0x5b   : > { %1169 = vmatpush3.bf16.msra.mxu0 %v1257_v6  ;;  %1204 = vmatpush3.bf16.msra.mxu1 %v1257_v6  ;;  %vm1547_vm15 = vmand %vm447_vm7, %vm464_vm8  ;;  %vm445_vm7 = vcmp.ge.s32.totalorder %v428_v39, %v1507_v25  ;;  %vm462_vm8 = vcmp.lt.s32.totalorder %v428_v39, %v1509_v26  ;;  %v431_v63 = vadd.s32 %v1501_v20, %v414_v56 }
  0x5c   : > { %1170 = vmatprep.subr.bf16.mxu0 %v1258_v7  ;;  %1197 = vmatprep.subr.bf16.mxu1 %v1258_v7  ;;  %vm1551_vm0 = vmand %vm436_vm10, %vm453_vm11  ;;  %vm459_vm10 = vcmp.lt.s32.totalorder %v425_v43, %v1509_v26  ;;  %vm467_vm11 = vcmp.lt.s32.totalorder %v433_v49, %v1509_v26  ;;  %v432_v5 = vadd.s32 %v1501_v20, %v415_v58 }
  0x5d   : > { %vm1559_vm3 = vmand %vm437_vm13, %vm454_vm14  ;;  %vm443_vm14 = vcmp.ge.s32.totalorder %v426_v46, %v1507_v25  ;;  %v1718_v16 = vrot.slane %v519_v0, %v522_v62 }
  0x5e   : > { %vm1579_vm13 = vmand %vm444_vm1, %vm461_vm2  ;;  %vm450_vm2 = vcmp.ge.s32.totalorder %v433_v49, %v1507_v25 }
  0x5f   : > { %1171 = vmatpush3.bf16.msra.mxu0 %v1258_v7  ;;  %1205 = vmatpush3.bf16.msra.mxu1 %v1258_v7  ;;  %v1896_v48 = vsel %vm1579_vm13, 4294967295, %v1895_v48  ;;  %vm1593_vm1 = vmand %vm445_vm7, %vm462_vm8  ;;  %vm468_vm8 = vcmp.lt.s32.totalorder %v434_v52, %v1509_v26 }
  0x60   : > { %1172 = vmatprep.subr.bf16.mxu0 %v1259_v8  ;;  %1198 = vmatprep.subr.bf16.mxu1 %v1259_v8  ;;  %v1898_v51 = vsel %vm1593_vm1, 4294967295, %v1897_v51  ;;  %vm1608_vm7 = vmand %vm442_vm4, %vm459_vm10  ;;  %vm451_vm10 = vcmp.ge.s32.totalorder %v434_v52, %v1507_v25  ;;  %vm457_vm4 = vcmp.lt.s32.totalorder %v423_v55, %v1509_v26  ;;  %v1272_v52 = vld [vmem:[%s1473_s24 + $0x20] sm:$0xff]  }
  0x61   : > { %vm1619_vm13 = vmand %vm443_vm14, %vm460_vm5  ;;  %vm440_vm14 = vcmp.ge.s32.totalorder %v423_v55, %v1507_v25 }
  0x62   : > { %vm1630_vm1 = vmand %vm450_vm2, %vm467_vm11 }
  0x63   : > { %1173 = vmatpush3.bf16.msra.mxu0 %v1259_v8  ;;  %1206 = vmatpush3.bf16.msra.mxu1 %v1259_v8  ;;  %vm1905_vm11 = vmpackc.low %vm1525_vm6, %vm1525_vm6 }
  0x64   : > { %1174 = vmatprep.subr.bf16.mxu0 %v1260_v9  ;;  %1199 = vmatprep.subr.bf16.mxu1 %v1260_v9  ;;  %v791_v2 = vsel %vm1905_vm11, 65537, %v1371_v1  ;;  %vm1906_vm2 = vmpackc.low %vm1533_vm9, %vm1533_vm9  ;;  %vm458_vm11 = vcmp.lt.s32.totalorder %v424_v60, %v1509_v26 }
  0x65   : > { %v792_v3 = vsel %vm1906_vm2, 65537, %v1371_v1  ;;  %vm1653_vm5 = vmand %vm451_vm10, %vm468_vm8  ;;  %vm441_vm10 = vcmp.ge.s32.totalorder %v424_v60, %v1507_v25  ;;  %vm1913_vm2 = vnez %v1896_v48 }
  0x66   : > { %vm1909_vm6 = vmpackc.low %vm1539_vm12, %vm1539_vm12 }
  0x67   : > { %1175 = vmatpush3.bf16.msra.mxu0 %v1260_v9  ;;  %1207 = vmatpush3.bf16.msra.mxu1 %v1260_v9  ;;  %v799_v6 = vsel %vm1909_vm6, 65537, %v1371_v1  ;;  %vm1910_vm9 = vmpackc.low %vm1547_vm15, %vm1547_vm15 }
  0x68   : > { %v800_v7 = vsel %vm1910_vm9, 65537, %v1371_v1  ;;  %vm787_vm8 = vmpackc.low %vm1630_vm1, %vm1630_vm1  ;;  %vm1915_vm9 = vnez %v1898_v51  ;;  %v1271_v51 = vld [vmem:[%s1473_s24] sm:$0xff]  }
  0x69   : > { %vm1911_vm12 = vmpackc.low %vm1551_vm0, %vm1551_vm0  ;;  %v803_v21 = vsel %vm787_vm8, 65537, %v1371_v1 }
  0x6a   : > { %1177 = vmatmul.mubr.bf16.vlgmr.msra.gmra.mrb[0].mxu0 %v1263_v10  ;;  %1185 = vmatmul.mubr.bf16.vlgmr.msra.gmra.mrb[0].mxu1 %v1264_v11  ;;  %v789_v8 = vsel %vm1911_vm12, 65537, %v1371_v1  ;;  %vm1912_vm15 = vmpackc.low %vm1559_vm3, %vm1559_vm3 }
  0x6b   : > { %1180 = vmatprep.mubr.bf16.mxu0 %v1265_v12  ;;  %1188 = vmatprep.mubr.bf16.mxu1 %v1266_v13  ;;  %v790_v9 = vsel %vm1912_vm15, 65537, %v1371_v1  ;;  %vm1914_vm6 = vmpackc.low %vm1913_vm2, %vm1913_vm2  ;;  %vm448_vm15 = vcmp.ge.s32.totalorder %v431_v63, %v1507_v25  ;;  %vm465_vm2 = vcmp.lt.s32.totalorder %v431_v63, %v1509_v26  ;;  %v1110_v13 = vcombine.low %v791_v2, %v792_v3 }
  0x6c   : > { %v797_v10 = vsel %vm1914_vm6, 65537, %v1371_v1  ;;  %vm1916_vm0 = vmpackc.low %vm1915_vm9, %vm1915_vm9  ;;  %vm449_vm9 = vcmp.ge.s32.totalorder %v432_v5, %v1507_v25  ;;  %v1109_v17 = vcombine.low %v789_v8, %v790_v9 }
  0x6d   : > { %v798_v11 = vsel %vm1916_vm0, 65537, %v1371_v1  ;;  %vm1703_vm3 = vmand %vm440_vm14, %vm457_vm4  ;;  %vm466_vm4 = vcmp.lt.s32.totalorder %v432_v5, %v1509_v26 }
  0x6e   : > { %vm788_vm12 = vmpackc.low %vm1653_vm5, %vm1653_vm5  ;;  %v1113_v18 = vcombine.low %v797_v10, %v798_v11  ;;  %vm1763_vm0 = vcmp.ne.s16.totalorder %v1109_v17, 0 }
  0x6f   : > { %vm1712_vm6 = vmand %vm441_vm10, %vm458_vm11  ;;  %v804_v22 = vsel %vm788_vm12, 65537, %v1371_v1 }
  0x70   : > { %vm777_vm5 = vmpackc.low %vm1703_vm3, %vm1703_vm3  ;;  %vm1767_vm12 = vcmp.ne.s16.totalorder %v1113_v18, 0  ;;  %v1116_v36 = vcombine.low %v803_v21, %v804_v22  ;;  %v1273_v21 = vld [vmem:[%s1473_s24 + $0x18] sm:$0xff]  }
  0x71   : > { %vm1921_vm14 = vmpackc.low %vm1608_vm7, %vm1608_vm7  ;;  %v793_v53 = vsel %vm777_vm5, 65537, %v1371_v1 }
  0x72   : > { %1181 = vmatmul.mubr.bf16.gmra.mrb[4].mxu0 %v1267_v14  ;;  %1189 = vmatmul.mubr.bf16.gmra.mrb[4].mxu1 %v1268_v15  ;;  %v1114_v14 = vcombine.low %v799_v6, %v800_v7  ;;  %v795_v19 = vsel %vm1921_vm14, 65537, %v1371_v1  ;;  %vm1922_vm10 = vmpackc.low %vm1619_vm13, %vm1619_vm13  ;;  %vm1752_vm13 = vcmp.ne.s16.totalorder %v1110_v13, 0 }
  0x73   : > { %v796_v20 = vsel %vm1922_vm10, 65537, %v1371_v1  ;;  %vm1744_vm7 = vmand %vm448_vm15, %vm465_vm2 }
  0x74   : > { %vm1748_vm11 = vmand %vm449_vm9, %vm466_vm4  ;;  %vm1756_vm1 = vcmp.ne.s16.totalorder %v1114_v14, 0  ;;  %v1112_v35 = vcombine.low %v795_v19, %v796_v20 }
  0x75   : > { %vm778_vm8 = vmpackc.low %vm1712_vm6, %vm1712_vm6  ;;  %vm1816_vm6 = vcmp.ne.s16.totalorder %v1116_v36, 0 }
  0x76   : > { %vm785_vm15 = vmpackc.low %vm1744_vm7, %vm1744_vm7  ;;  %v794_v54 = vsel %vm778_vm8, 65537, %v1371_v1  ;;  %vm1812_vm3 = vcmp.ne.s16.totalorder %v1112_v35, 0 }
  0x77   : > { %vm786_vm2 = vmpackc.low %vm1748_vm11, %vm1748_vm11  ;;  %v801_v57 = vsel %vm785_vm15, 65537, %v1371_v1  ;;  %v1111_v9 = vcombine.low %v793_v53, %v794_v54 }
  0x78   : > { %v802_v58 = vsel %vm786_vm2, 65537, %v1371_v1 }
  0x79   : > { %v1115_v10 = vcombine.low %v801_v57, %v802_v58  ;;  %vm831_vm9 = vcmp.ne.s16.totalorder %v1111_v9, 0 }
  0x7b   : > { %vm835_vm4 = vcmp.ne.s16.totalorder %v1115_v10, 0 }
 0x13d   : > { %v1178_v24 = vpop.f32.mrb[0].mxu0  ;;  %v1186_v26 = vpop.f32.mrb[0].mxu1 }
 0x13e   : > { %v654_v28 = vpop.f32.mrb[1].mxu0  ;;  %v686_v29 = vpop.f32.mrb[1].mxu1  ;;  %v663_v37 = vadd.f32 %v1178_v24, %v1718_v16  ;;  %v695_v38 = vadd.f32 %v1186_v26, %v1718_v16 }
 0x13f   : > { %v1179_v31 = vpop.f32.mrb[2].mxu0  ;;  %v1187_v32 = vpop.f32.mrb[2].mxu1  ;;  %v655_v45 = vadd.f32 %v654_v28, %v1718_v16  ;;  %v687_v46 = vadd.f32 %v686_v29, %v1718_v16 }
 0x140   : > { %v666_v39 = vadd.f32 %v1179_v31, %v1718_v16  ;;  %v698_v41 = vadd.f32 %v1187_v32, %v1718_v16  ;;  %v657_v43 = vpop.f32.mrb[3].mxu0  ;;  %v689_v44 = vpop.f32.mrb[3].mxu1  ;;  %v1275_v32 = vld [vmem:[%s1473_s24 + $0x10] sm:$0xff]  }
 0x141   : > { %v658_v47 = vadd.f32 %v657_v43, %v1718_v16  ;;  %v690_v48 = vadd.f32 %v689_v44, %v1718_v16 }
 0x142   : > { %v718_v49 = vpack.c.bf16 %v666_v39, %v663_v37  ;;  %v722_v50 = vpack.c.bf16 %v698_v41, %v695_v38 }
 0x143   : > { %v717_v55 = vpack.c.bf16 %v658_v47, %v655_v45  ;;  %v721_v56 = vpack.c.bf16 %v690_v48, %v687_v46 }
 0x144   : > { %v886_v59 = vsel %vm1752_vm13, %v718_v49, %v1269_v40  ;;  %v890_v60 = vsel %vm1756_vm1, %v722_v50, %v1270_v42 }
 0x145   : > { %v1127_v63 = vcombine.low %v886_v59, %v886_v59  ;;  %v1128_v0 = vcombine.high %v886_v59, %v886_v59  ;;  %v1135_v1 = vcombine.low %v890_v60, %v890_v60  ;;  %v1136_v2 = vcombine.high %v890_v60, %v890_v60  ;;  %v1182_v3 = vpop.f32.mrb[4].mxu0  ;;  %v1190_v4 = vpop.f32.mrb[4].mxu1 }
 0x146   : > { %v885_v5 = vsel %vm1763_vm0, %v717_v55, %v1271_v51  ;;  %v889_v6 = vsel %vm1767_vm12, %v721_v56, %v1272_v52  ;;  %v670_v7 = vpop.f32.mrb[5].mxu0  ;;  %v702_v8 = vpop.f32.mrb[5].mxu1  ;;  %v679_v18 = vadd.f32 %v1182_v3, %v1718_v16  ;;  %v711_v19 = vadd.f32 %v1190_v4, %v1718_v16 }
 0x147   : > { %951 = vst [vmem:[%s1473_s24 + $0x8] sm:$0xf] %v1127_v63  ;;  %952 = vst [vmem:[%s1473_s24 + $0xc] sm:$0xf] %v1128_v0  ;;  %v1125_v11 = vcombine.low %v885_v5, %v885_v5  ;;  %v1126_v12 = vcombine.high %v885_v5, %v885_v5  ;;  %v1133_v13 = vcombine.low %v889_v6, %v889_v6  ;;  %v1183_v15 = vpop.f32.mrb[6].mxu0  ;;  %v1191_v17 = vpop.f32.mrb[6].mxu1 }
 0x148   : > { %959 = vst [vmem:[%s1473_s24 + $0x28] sm:$0xf] %v1135_v1  ;;  %960 = vst [vmem:[%s1473_s24 + $0x2c] sm:$0xf] %v1136_v2  ;;  %v1134_v14 = vcombine.high %v889_v6, %v889_v6  ;;  %v682_v20 = vadd.f32 %v1183_v15, %v1718_v16  ;;  %v714_v22 = vadd.f32 %v1191_v17, %v1718_v16  ;;  %v673_v24 = vpop.f32.mrb[7].mxu0  ;;  %v705_v26 = vpop.f32.mrb[7].mxu1 }
 0x149   : > { %949 = vst [vmem:[%s1473_s24] sm:$0xf] %v1125_v11  ;;  %950 = vst [vmem:[%s1473_s24 + $0x4] sm:$0xf] %v1126_v12  ;;  %v671_v27 = vadd.f32 %v670_v7, %v1718_v16  ;;  %v703_v28 = vadd.f32 %v702_v8, %v1718_v16  ;;  %v674_v29 = vadd.f32 %v673_v24, %v1718_v16 }
 0x14a   : > { %957 = vst [vmem:[%s1473_s24 + $0x20] sm:$0xf] %v1133_v13  ;;  %958 = vst [vmem:[%s1473_s24 + $0x24] sm:$0xf] %v1134_v14  ;;  %v706_v30 = vadd.f32 %v705_v26, %v1718_v16  ;;  %v720_v25 = vpack.c.bf16 %v682_v20, %v679_v18  ;;  %v724_v31 = vpack.c.bf16 %v714_v22, %v711_v19 }
 0x14b   : > { %v719_v34 = vpack.c.bf16 %v674_v29, %v671_v27 }
 0x14c   : > { %v723_v35 = vpack.c.bf16 %v706_v30, %v703_v28  ;;  %v888_v36 = vsel %vm1812_vm3, %v720_v25, %v1273_v21  ;;  %v892_v37 = vsel %vm1816_vm6, %v724_v31, %v1274_v23 }
 0x14d   : > { %v1131_v16 = vcombine.low %v888_v36, %v888_v36  ;;  %v1132_v38 = vcombine.high %v888_v36, %v888_v36  ;;  %v1139_v39 = vcombine.low %v892_v37, %v892_v37  ;;  %v1140_v40 = vcombine.high %v892_v37, %v892_v37 }
 0x14e   : > { %v887_v41 = vsel %vm831_vm9, %v719_v34, %v1275_v32  ;;  %v891_v42 = vsel %vm835_vm4, %v723_v35, %v1276_v33 }
 0x14f   : > { %955 = vst [vmem:[%s1473_s24 + $0x18] sm:$0xf] %v1131_v16  ;;  %956 = vst [vmem:[%s1473_s24 + $0x1c] sm:$0xf] %v1132_v38  ;;  %v1129_v43 = vcombine.low %v887_v41, %v887_v41  ;;  %v1130_v44 = vcombine.high %v887_v41, %v887_v41  ;;  %v1137_v45 = vcombine.low %v891_v42, %v891_v42 }
 0x150   : > { %963 = vst [vmem:[%s1473_s24 + $0x38] sm:$0xf] %v1139_v39  ;;  %964 = vst [vmem:[%s1473_s24 + $0x3c] sm:$0xf] %v1140_v40  ;;  %v1138_v46 = vcombine.high %v891_v42, %v891_v42 }
 0x151   : > { %953 = vst [vmem:[%s1473_s24 + $0x10] sm:$0xf] %v1129_v43  ;;  %954 = vst [vmem:[%s1473_s24 + $0x14] sm:$0xf] %v1130_v44 }
 0x152   : > { %961 = vst [vmem:[%s1473_s24 + $0x30] sm:$0xf] %v1137_v45  ;;  %962 = vst [vmem:[%s1473_s24 + $0x34] sm:$0xf] %v1138_v46 }
 0x153 PF: > { %s35_s21 = sadd.s32 1, %s1365_s21   ;;  %s1939_s3 = smov %s1357_s19 }
 0x154   : > { %p32_p1 = scmp.ge.s32.totalorder %s35_s21, 10   ;;  %s1940_s18 = smov %s1361_s20 }
 0x155   : > { %s1941_s19 = smov %s1944_s22  ;;  %s1942_s20 = smov %s1948_s23 }
 0x156   :  { %34 = sbr.rel (!%p32_p1) target bundleno = 49 (0x31), region = 70 }

</bundles_post_ra>
